<compile_context>
chip_gen: v7x
topology: tpu7x:2x2x1
jax: 0.10.0
libtpu: 0.0.40
codegen_flags: <defaults>
</compile_context>

<pallas_src>
import functools

import jax
import jax.numpy as jnp
import numpy as np
from jax.experimental import pallas as pl
from jax.experimental.pallas import tpu as pltpu

# ---------------- config (small, deterministic) ----------------
NUM_USERS = 10
NUM_ITEMS = 10
EMB_DIM = 32          # D   (FC acts on D*D = 1024 features)
BATCH = 8             # B
REG = 0.01
OUT_LANES = 128       # lane-dense merged output width


def _round_up(x: int, m: int) -> int:
    return (x + m - 1) // m * m


def _outer_kernel(users_ref, items_ref,   # VMEM (BT, 1) int32 ids (-1 = padding row)
                  uemb_ref, iemb_ref,     # VMEM (NU_pad, D) / (NI_pad, D) f32 tables
                  w_ref,                  # VMEM (D, D) f32  (FC weight, row-major reshape)
                  out_ref):               # VMEM (BT, 128) f32 merged output tile
    bt = out_ref.shape[0]
    nu = uemb_ref.shape[0]
    ni = iemb_ref.shape[0]

    # ---- one-hot MXU gather: (BT, N) one-hot @ (N, D) table ----
    # Padding ids (-1) match no column -> exact zero embedding row (no OOB read).
    uid = users_ref[...]                                                   # (BT, 1)
    iid = items_ref[...]
    u_oh = (uid == jax.lax.broadcasted_iota(jnp.int32, (bt, nu), 1)).astype(jnp.float32)
    i_oh = (iid == jax.lax.broadcasted_iota(jnp.int32, (bt, ni), 1)).astype(jnp.float32)
    u = jnp.dot(u_oh, uemb_ref[...], preferred_element_type=jnp.float32,
                precision=jax.lax.Precision.HIGHEST)                       # (BT, D)
    it = jnp.dot(i_oh, iemb_ref[...], preferred_element_type=jnp.float32,
                 precision=jax.lax.Precision.HIGHEST)                      # (BT, D)

    # constrain(FC.weight): single row -> Frobenius norm of W, clamped to >= 1.
    # FC is linear with no bias, so scale the output instead of the weight.
    w = w_ref[...]                                                         # (D, D)
    wnorm = jnp.sqrt(jnp.sum(w * w))
    inv_scale = 1.0 / jnp.maximum(wnorm, 1.0)

    # inferences[b] = sum_{j,k} u[b,j] * W[j,k] * i[b,k] = rowsum((u @ W) * i)
    s = jnp.dot(u, w, preferred_element_type=jnp.float32,
                precision=jax.lax.Precision.HIGHEST)                       # (BT, D)
    inf = jnp.sum(s * it, axis=-1, keepdims=True) * inv_scale              # (BT, 1)

    # Per-tile partial sums of squares for the batch Frobenius norms
    # (padding rows are exactly zero -> contribute nothing).
    ssq_u = jnp.sum(u * u)
    ssq_i = jnp.sum(it * it)

    # Single lane-dense (BT, 128) unmasked store:
    #   lane 0 = inference[b], lane 1 = tile ssq_u, lane 2 = tile ssq_i.
    lane = jax.lax.broadcasted_iota(jnp.int32, out_ref.shape, 1)
    out = jnp.where(lane == 0, inf, 0.0)
    out = jnp.where(lane == 1, ssq_u, out)
    out = jnp.where(lane == 2, ssq_i, out)
    out_ref[...] = out


@jax.jit
def outer_forward(users, items, params):
    """Outer.forward: fused embedding gather + outer-product FC + regs."""
    user_emb = params["user_emb"]        # (NU, D)
    item_emb = params["item_emb"]        # (NI, D)
    fc_w = params["fc_w"]                # (1, D*D)

    B = users.shape[0]
    NU, D = user_emb.shape
    NI = item_emb.shape[0]

    # Batch tiling: lane-dense (BT, 128) output tiles, batch axis padded with -1 ids.
    BT = min(128, _round_up(B, 8))
    B_pad = _round_up(B, BT)
    nt = B_pad // BT

    NU_pad = _round_up(NU, 8)
    NI_pad = _round_up(NI, 8)

    users_p = jnp.full((B_pad, 1), -1, jnp.int32).at[:B, 0].set(users.astype(jnp.int32))
    items_p = jnp.full((B_pad, 1), -1, jnp.int32).at[:B, 0].set(items.astype(jnp.int32))
    uemb_p = jnp.zeros((NU_pad, D), jnp.float32).at[:NU].set(user_emb)
    iemb_p = jnp.zeros((NI_pad, D), jnp.float32).at[:NI].set(item_emb)
    w2d = fc_w.reshape(D, D)             # row-major: w[j, k] == fc_w[0, j*D + k]

    flops = 2 * B_pad * (NU_pad * D + NI_pad * D + D * D + D)
    bytes_accessed = 4 * (users_p.size + items_p.size + uemb_p.size + iemb_p.size
                          + w2d.size + B_pad * OUT_LANES)

    out = pl.pallas_call(
        _outer_kernel,
        out_shape=jax.ShapeDtypeStruct((B_pad, OUT_LANES), jnp.float32),
        grid=(nt,),
        in_specs=[
            pl.BlockSpec((BT, 1), lambda b: (b, 0)),          # user ids (per-tile)
            pl.BlockSpec((BT, 1), lambda b: (b, 0)),          # item ids (per-tile)
            pl.BlockSpec((NU_pad, D), lambda b: (0, 0)),      # user table (grid-invariant)
            pl.BlockSpec((NI_pad, D), lambda b: (0, 0)),      # item table (grid-invariant)
            pl.BlockSpec((D, D), lambda b: (0, 0)),           # FC weight (grid-invariant)
        ],
        out_specs=pl.BlockSpec((BT, OUT_LANES), lambda b: (b, 0)),
        compiler_params=pltpu.CompilerParams(
            dimension_semantics=("parallel",)),               # batch tiles are independent
        cost_estimate=pl.CostEstimate(flops=int(flops),
                                      transcendentals=int(nt),
                                      bytes_accessed=int(bytes_accessed)),
    )(users_p, items_p, uemb_p, iemb_p, w2d)

    inferences = out[:B, 0:1]                                 # (B, 1)
    ssq_u = jnp.sum(out[::BT, 1])                             # reduce per-tile partials
    ssq_i = jnp.sum(out[::BT, 2])
    regs = REG * (jnp.sqrt(ssq_u) + jnp.sqrt(ssq_i))
    return inferences, regs


def reference_forward(users, items, params):
    """Pure-JAX reference mirroring the PyTorch `Outer` module exactly."""
    u = params["user_emb"][users]        # (B, D)
    it = params["item_emb"][items]       # (B, D)
    B, D = u.shape

    w = params["fc_w"]                   # (1, D*D)
    c = jnp.maximum(jnp.linalg.norm(w, axis=1, keepdims=True), 1.0)
    w_eff = w / c                        # constrained weight

    outer = (u[:, :, None] * it[:, None, :]).reshape(B, D * D)   # flatten j*D + k
    inf = jnp.dot(outer, w_eff[0][:, None],
                  precision=jax.lax.Precision.HIGHEST)           # (B, 1)
    regs = REG * (jnp.linalg.norm(u) + jnp.linalg.norm(it))
    return inf, regs


def init_params(key):
    ks = jax.random.split(key, 3)
    f32 = jnp.float32
    return {
        "user_emb": jax.random.normal(ks[0], (NUM_USERS, EMB_DIM), f32) * 0.1,
        "item_emb": jax.random.normal(ks[1], (NUM_ITEMS, EMB_DIM), f32) * 0.1,
        # FC: Linear(EMB_DIM**2, 1, bias=False) -> weight (1, D*D)
        "fc_w": jax.random.normal(ks[2], (1, EMB_DIM * EMB_DIM), f32) * 0.1,
    }


if __name__ == "__main__":
    key = jax.random.PRNGKey(0)
    k_param, k_u, k_i = jax.random.split(key, 3)
    params = init_params(k_param)

    users = jax.random.randint(k_u, (BATCH,), 0, NUM_USERS)
    items = jax.random.randint(k_i, (BATCH,), 0, NUM_ITEMS)

    inferences, regs = outer_forward(users, items, params)
    jax.block_until_ready((inferences, regs))

    ref_inf, ref_regs = reference_forward(users, items, params)
    np.testing.assert_allclose(np.asarray(inferences), np.asarray(ref_inf),
                               rtol=1e-4, atol=1e-5)
    np.testing.assert_allclose(float(regs), float(ref_regs), rtol=1e-4, atol=1e-5)

    print("KERNEL_OK")
</pallas_src>

<mosaic_0001>
module attributes {stable_mosaic.version = 11 : i64} {
  func.func @_outer_kernel(%arg0: i32, %arg1: memref<8x1xi32, #tpu.memory_space<vmem>>, %arg2: memref<8x1xi32, #tpu.memory_space<vmem>>, %arg3: memref<16x32xf32, #tpu.memory_space<vmem>>, %arg4: memref<16x32xf32, #tpu.memory_space<vmem>>, %arg5: memref<32x32xf32, #tpu.memory_space<vmem>>, %arg6: memref<8x128xf32, #tpu.memory_space<vmem>>) attributes {dimension_semantics = [#tpu.dimension_semantics<parallel>], iteration_bounds = array<i64: 1>, scalar_prefetch = 0 : i64, scratch_operands = 0 : i64, tpu.core_type = #tpu.core_type<tc>, window_params = [{transform_indices = @transform_0, window_bounds = array<i64: 8, 1>}, {transform_indices = @transform_1, window_bounds = array<i64: 8, 1>}, {pipeline_mode = #tpu.pipeline_mode<synchronous>, transform_indices = @transform_2, window_bounds = array<i64: 16, 32>}, {pipeline_mode = #tpu.pipeline_mode<synchronous>, transform_indices = @transform_3, window_bounds = array<i64: 16, 32>}, {pipeline_mode = #tpu.pipeline_mode<synchronous>, transform_indices = @transform_4, window_bounds = array<i64: 32, 32>}, {transform_indices = @transform_5, window_bounds = array<i64: 8, 128>}]} {
    %c0 = arith.constant 0 : index
    %c0_0 = arith.constant 0 : index
    %0 = vector.load %arg1[%c0, %c0_0] : memref<8x1xi32, #tpu.memory_space<vmem>>, vector<8x1xi32>
    %c0_1 = arith.constant 0 : index
    %c0_2 = arith.constant 0 : index
    %1 = vector.load %arg2[%c0_1, %c0_2] : memref<8x1xi32, #tpu.memory_space<vmem>>, vector<8x1xi32>
    %2 = tpu.iota {dimensions = array<i32: 1>} : vector<8x16xi32>
    %3 = vector.broadcast %0 : vector<8x1xi32> to vector<8x16xi32>
    %4 = arith.cmpi eq, %3, %2 : vector<8x16xi32>
    %5 = arith.extui %4 : vector<8x16xi1> to vector<8x16xi32>
    %6 = arith.sitofp %5 : vector<8x16xi32> to vector<8x16xf32>
    %7 = tpu.iota {dimensions = array<i32: 1>} : vector<8x16xi32>
    %8 = vector.broadcast %1 : vector<8x1xi32> to vector<8x16xi32>
    %9 = arith.cmpi eq, %8, %7 : vector<8x16xi32>
    %10 = arith.extui %9 : vector<8x16xi1> to vector<8x16xi32>
    %11 = arith.sitofp %10 : vector<8x16xi32> to vector<8x16xf32>
    %c0_3 = arith.constant 0 : index
    %c0_4 = arith.constant 0 : index
    %12 = vector.load %arg3[%c0_3, %c0_4] : memref<16x32xf32, #tpu.memory_space<vmem>>, vector<16x32xf32>
    %cst = arith.constant dense<0.000000e+00> : vector<8x32xf32>
    %13 = tpu.matmul %6, %12, %cst {dimension_numbers = #tpu.dot_dimension_numbers<[1], [0], [0], [1], [0, 0, 1, 1], [], []>, precision = #tpu.contract_precision<fp32>} : vector<8x16xf32>, vector<16x32xf32>, vector<8x32xf32> -> vector<8x32xf32>
    %c0_5 = arith.constant 0 : index
    %c0_6 = arith.constant 0 : index
    %14 = vector.load %arg4[%c0_5, %c0_6] : memref<16x32xf32, #tpu.memory_space<vmem>>, vector<16x32xf32>
    %cst_7 = arith.constant dense<0.000000e+00> : vector<8x32xf32>
    %15 = tpu.matmul %11, %14, %cst_7 {dimension_numbers = #tpu.dot_dimension_numbers<[1], [0], [0], [1], [0, 0, 1, 1], [], []>, precision = #tpu.contract_precision<fp32>} : vector<8x16xf32>, vector<16x32xf32>, vector<8x32xf32> -> vector<8x32xf32>
    %c0_8 = arith.constant 0 : index
    %c0_9 = arith.constant 0 : index
    %16 = vector.load %arg5[%c0_8, %c0_9] : memref<32x32xf32, #tpu.memory_space<vmem>>, vector<32x32xf32>
    %17 = arith.mulf %16, %16 : vector<32x32xf32>
    %18 = vector.shape_cast %17 : vector<32x32xf32> to vector<1x32x32xf32>
    %cst_10 = arith.constant dense<0.000000e+00> : vector<1xf32>
    %19 = vector.multi_reduction <add>, %18, %cst_10 [1, 2] : vector<1x32x32xf32> to vector<1xf32>
    %20 = vector.shape_cast %19 : vector<1xf32> to vector<1x1x1xf32>
    %21 = vector.extract %20[0, 0, 0] : f32 from vector<1x1x1xf32>
    %22 = math.sqrt %21 : f32
    %cst_11 = arith.constant 1.000000e+00 : f32
    %23 = arith.maximumf %22, %cst_11 : f32
    %cst_12 = arith.constant 1.000000e+00 : f32
    %24 = arith.divf %cst_12, %23 : f32
    %cst_13 = arith.constant dense<0.000000e+00> : vector<8x32xf32>
    %25 = tpu.matmul %13, %16, %cst_13 {dimension_numbers = #tpu.dot_dimension_numbers<[1], [0], [0], [1], [0, 0, 1, 1], [], []>, precision = #tpu.contract_precision<fp32>} : vector<8x32xf32>, vector<32x32xf32>, vector<8x32xf32> -> vector<8x32xf32>
    %26 = arith.mulf %25, %15 : vector<8x32xf32>
    %cst_14 = arith.constant dense<0.000000e+00> : vector<8xf32>
    %27 = vector.multi_reduction <add>, %26, %cst_14 [1] : vector<8x32xf32> to vector<8xf32>
    %28 = vector.shape_cast %27 : vector<8xf32> to vector<8x1xf32>
    %29 = vector.broadcast %24 : f32 to vector<8x1xf32>
    %30 = arith.mulf %28, %29 : vector<8x1xf32>
    %31 = arith.mulf %13, %13 : vector<8x32xf32>
    %32 = vector.shape_cast %31 : vector<8x32xf32> to vector<1x8x32xf32>
    %cst_15 = arith.constant dense<0.000000e+00> : vector<1xf32>
    %33 = vector.multi_reduction <add>, %32, %cst_15 [1, 2] : vector<1x8x32xf32> to vector<1xf32>
    %34 = vector.shape_cast %33 : vector<1xf32> to vector<1x1x1xf32>
    %35 = vector.extract %34[0, 0, 0] : f32 from vector<1x1x1xf32>
    %36 = arith.mulf %15, %15 : vector<8x32xf32>
    %37 = vector.shape_cast %36 : vector<8x32xf32> to vector<1x8x32xf32>
    %cst_16 = arith.constant dense<0.000000e+00> : vector<1xf32>
    %38 = vector.multi_reduction <add>, %37, %cst_16 [1, 2] : vector<1x8x32xf32> to vector<1xf32>
    %39 = vector.shape_cast %38 : vector<1xf32> to vector<1x1x1xf32>
    %40 = vector.extract %39[0, 0, 0] : f32 from vector<1x1x1xf32>
    %41 = tpu.iota {dimensions = array<i32: 1>} : vector<8x128xi32>
    %c0_i32 = arith.constant 0 : i32
    %42 = vector.broadcast %c0_i32 : i32 to vector<8x128xi32>
    %43 = arith.cmpi eq, %41, %42 : vector<8x128xi32>
    %cst_17 = arith.constant 0.000000e+00 : f32
    %44 = vector.shape_cast %30 : vector<8x1xf32> to vector<8x1xf32>
    %45 = vector.broadcast %44 : vector<8x1xf32> to vector<8x128xf32>
    %46 = vector.broadcast %cst_17 : f32 to vector<8x128xf32>
    %47 = arith.select %43, %45, %46 : vector<8x128xi1>, vector<8x128xf32>
    %c1_i32 = arith.constant 1 : i32
    %48 = vector.broadcast %c1_i32 : i32 to vector<8x128xi32>
    %49 = arith.cmpi eq, %41, %48 : vector<8x128xi32>
    %50 = vector.broadcast %35 : f32 to vector<8x128xf32>
    %51 = arith.select %49, %50, %47 : vector<8x128xi1>, vector<8x128xf32>
    %c2_i32 = arith.constant 2 : i32
    %52 = vector.broadcast %c2_i32 : i32 to vector<8x128xi32>
    %53 = arith.cmpi eq, %41, %52 : vector<8x128xi32>
    %54 = vector.broadcast %40 : f32 to vector<8x128xf32>
    %55 = arith.select %53, %54, %51 : vector<8x128xi1>, vector<8x128xf32>
    %c0_18 = arith.constant 0 : index
    %c0_19 = arith.constant 0 : index
    %56 = vector.load %arg6[%c0_18, %c0_19] : memref<8x128xf32, #tpu.memory_space<vmem>>, vector<8x128xf32>
    tpu.vector_store %arg6[%c0_18, %c0_19], %55 {strides = array<i32>} : memref<8x128xf32, #tpu.memory_space<vmem>>, vector<8x128xf32>,
    return
  }
  func.func @transform_0(%arg0: i32) -> (i32, i32) {
    %c0_i32 = arith.constant 0 : i32
    %c0_i32_0 = arith.constant 0 : i32
    return %arg0, %c0_i32 : i32, i32
  }
  func.func @transform_1(%arg0: i32) -> (i32, i32) {
    %c0_i32 = arith.constant 0 : i32
    %c0_i32_0 = arith.constant 0 : i32
    return %arg0, %c0_i32 : i32, i32
  }
  func.func @transform_2(%arg0: i32) -> (i32, i32) {
    %c0_i32 = arith.constant 0 : i32
    %c0_i32_0 = arith.constant 0 : i32
    %c0_i32_1 = arith.constant 0 : i32
    return %c0_i32, %c0_i32_0 : i32, i32
  }
  func.func @transform_3(%arg0: i32) -> (i32, i32) {
    %c0_i32 = arith.constant 0 : i32
    %c0_i32_0 = arith.constant 0 : i32
    %c0_i32_1 = arith.constant 0 : i32
    return %c0_i32, %c0_i32_0 : i32, i32
  }
  func.func @transform_4(%arg0: i32) -> (i32, i32) {
    %c0_i32 = arith.constant 0 : i32
    %c0_i32_0 = arith.constant 0 : i32
    %c0_i32_1 = arith.constant 0 : i32
    return %c0_i32, %c0_i32_0 : i32, i32
  }
  func.func @transform_5(%arg0: i32) -> (i32, i32) {
    %c0_i32 = arith.constant 0 : i32
    %c0_i32_0 = arith.constant 0 : i32
    return %arg0, %c0_i32 : i32, i32
  }
}

</mosaic_0001>

<bundles_post_ra>
// kernel: outer_forward.1
= control target key start
LH: loop header
LB: loop body
LE: loop exit
PB: predicated region body
PF: predicated region fallthrough
CT: control target
= control target key end

     0   :  { %v1877_v0 = vmov 0   ;;  %v1878_v10 = vmov 0.0|0.0   ;;  %vm1879_vm0 = vmmov 0   ;;  %v1880_v13 = vmov 0.0   ;;  %s1881_s10 = smov 1.0   ;;  %s2120_s0 = inlined_call_operand.vmem [shape: s32[8,1], index: 0, kind: input, shape index: {}]   ;;  %s2121_s1 = inlined_call_operand.vmem [shape: s32[8,1], index: 1, kind: input, shape index: {}]   ;;  %s2122_s2 = inlined_call_operand.vmem [shape: f32[16,32], index: 2, kind: input, shape index: {}]   ;;  %s2123_s3 = inlined_call_operand.vmem [shape: f32[16,32], index: 3, kind: input, shape index: {}]   ;;  %s2124_s4 = inlined_call_operand.vmem [shape: f32[32,32], index: 4, kind: input, shape index: {}]   ;;  %s2125_s5 = inlined_call_operand.vmem [shape: f32[8,128], index: 5, kind: output, shape index: {}]  }
   0x1   :  { %1872 = vset.pattern.permute.xlu0 %v1877_v0  ;;  %v20_v1 = vld [vmem:[%s2120_s0] sm:$0xff]  ;;  %v37_v4 = vld [vmem:[%s2122_s2 + $0x8] sm:$0xff]  ;;  %1756 = vmatprep.subr.bf16.mxu0 %v1878_v10  ;;  %v1981_v39 = vld [vmem:[%s2124_s4 + $0x10] sm:$0xff]  ;;  %vm973_vm1 = vcmask 261120   ;;  %v22_v52 = vlaneseq  ;;  %vm38_vm2 = vcmask 130048  }
   0x2   :  { %25 = vperm.xlu0 %1872, %v20_v1   ;;  %v21_v2 = vld [vmem:[%s2121_s1] sm:$0xff]  ;;  %v46_v6 = vand.u32 4294901760, %v37_v4  ;;  %1774 = vmatprep.subr.bf16.mxu1 %v1878_v10  ;;  %v502_v12 = vld [vmem:[%s2123_s3 + $0x8] sm:$0xff]  ;;  %v1986_v40 = vld [vmem:[%s2124_s4 + $0x18] sm:$0xff]  ;;  %v971_v43 = vmul.f32 %v1981_v39, %v1981_v39 }
   0x3   :  { %v36_v3 = vld [vmem:[%s2122_s2] sm:$0xff]  ;;  %1610 = vmatprep.mubr.msk.f32.mxu0 %vm1879_vm0, %v1880_v13  ;;  %v510_v17 = vand.u32 4294901760, %v502_v12  ;;  %1652 = vmatprep.mubr.msk.f32.mxu1 %vm1879_vm0, %v1880_v13  ;;  %v1976_v38 = vld [vmem:[%s2124_s4 + $0x8] sm:$0xff]  ;;  %v972_v44 = vmul.f32 %v1986_v40, %v1986_v40  ;;  %v2000_v53 = vand.u32 127, %v22_v52 }
   0x4   :  { %v43_v5 = vand.u32 4294901760, %v36_v3  ;;  %v1928_v9 = vsub.f32 %v37_v4, %v46_v6  ;;  %v501_v11 = vld [vmem:[%s2123_s3] sm:$0xff]  ;;  %v970_v42 = vmul.f32 %v1976_v38, %v1976_v38  ;;  %v977_v47 = vsel %vm973_vm1, %v971_v43, 0.0 }
   0x5   :  { %v507_v16 = vand.u32 4294901760, %v501_v11  ;;  %v1952_v22 = vsub.f32 %v502_v12, %v510_v17  ;;  %v1971_v37 = vld [vmem:[%s2124_s4] sm:$0xff]  ;;  %v979_v49 = vsel %vm973_vm1, %v972_v44, 0.0  ;;  %vm1519_vm7 = vcmp.eq.s32.totalorder %v2000_v53, 0 }
   0x6   :  { %31 = vperm.xlu0 %1872, %v21_v2   ;;  %v1924_v7 = vpack.c.bf16 %v46_v6, %v43_v5  ;;  %v1926_v8 = vsub.f32 %v36_v3, %v43_v5  ;;  %v129_v15 = vand.u32 4294901760, %v1928_v9  ;;  %v969_v41 = vmul.f32 %v1971_v37, %v1971_v37 }
   0x7   :  { %v1948_v20 = vpack.c.bf16 %v510_v17, %v507_v16  ;;  %v1950_v21 = vsub.f32 %v501_v11, %v507_v16  ;;  %v593_v26 = vand.u32 4294901760, %v1952_v22  ;;  %v975_v46 = vsel %vm973_vm1, %v970_v42, 0.0 }
   0x8   :  { %1758 = vmatpush3.bf16.msra.mxu0 %v1924_v7  ;;  %v122_v14 = vand.u32 4294901760, %v1926_v8  ;;  %v130_v19 = vsub.f32 %v1928_v9, %v129_v15  ;;  %v1763_v32 = vpack.c.bf16 %v1928_v9, %v1926_v8  ;;  %v974_v45 = vsel %vm973_vm1, %v969_v41, 0.0 }
   0x9   :  { %1759 = vmatprep.subr.bf16.mxu0 %v1878_v10  ;;  %1776 = vmatpush3.bf16.msra.mxu1 %v1948_v20  ;;  %v586_v25 = vand.u32 4294901760, %v1950_v21  ;;  %v594_v29 = vsub.f32 %v1952_v22, %v593_v26  ;;  %v1781_v34 = vpack.c.bf16 %v1952_v22, %v1950_v21  ;;  %v976_v48 = vadd.f32 %v975_v46, %v974_v45 }
   0xa   :  { %v123_v18 = vsub.f32 %v1926_v8, %v122_v14  ;;  %v131_v24 = vand.u32 4294901760, %v130_v19  ;;  %1777 = vmatprep.subr.bf16.mxu1 %v1878_v10  ;;  %v1964_v35 = vpack.c.bf16 %v129_v15, %v122_v14  ;;  %v1007_v4 = vand.u32 4294901760, %v1971_v37 }
   0xb   :  { %v587_v28 = vsub.f32 %v1950_v21, %v586_v25  ;;  %v595_v31 = vand.u32 4294901760, %v594_v29  ;;  %v1966_v36 = vpack.c.bf16 %v593_v26, %v586_v25  ;;  %v978_v50 = vadd.f32 %v977_v47, %v976_v48 }
   0xc   :  { %v124_v23 = vand.u32 4294901760, %v123_v18  ;;  %v1010_v5 = vand.u32 4294901760, %v1976_v38  ;;  %v1013_v6 = vand.u32 4294901760, %v1981_v39  ;;  %v2065_v9 = vsub.f32 %v1971_v37, %v1007_v4 }
   0xd   :  { %v588_v30 = vand.u32 4294901760, %v587_v28  ;;  %v980_v51 = vadd.f32 %v979_v49, %v978_v50  ;;  %vm1521_vm8 = vcmp.eq.s32.totalorder %v2000_v53, 1  ;;  %vm1524_vm9 = vcmp.eq.s32.totalorder %v2000_v53, 2 }
   0xe   :  { %v1760_v27 = vpack.c.bf16 %v131_v24, %v124_v23  ;;  %v2058_v8 = vpack.c.bf16 %v1010_v5, %v1007_v4  ;;  %v2068_v11 = vsub.f32 %v1976_v38, %v1010_v5  ;;  %v2073_v14 = vsub.f32 %v1981_v39, %v1013_v6 }
   0xf   :  { %v1778_v33 = vpack.c.bf16 %v595_v31, %v588_v30  ;;  %981 = vadd.xlane.f32.xlu1 %v980_v51  ;;  %v1088_v16 = vand.u32 4294901760, %v2065_v9 }
  0x10   :  { %v1095_v17 = vand.u32 4294901760, %v2068_v11  ;;  %v1102_v23 = vand.u32 4294901760, %v2073_v14 }
  0x11   :  { %v1089_v19 = vsub.f32 %v2065_v9, %v1088_v16 }
  0x12   :  { %v1817_v18 = vpack.c.bf16 %v1095_v17, %v1088_v16 }
  0x13   :  { %v1090_v21 = vand.u32 4294901760, %v1089_v19 }
  0x81   :  { %v26_v54 = vpop.permute.xlu0 %25 }
  0x82   :  { %vm27_vm3 = vcmp.eq.s32.totalorder %v26_v54, %v2000_v53 }
  0x83   :  { %v1532_v55 = vsel %vm27_vm3, 1.0, %v1880_v13 }
  0x84   :  { %v40_v56 = vsel %vm38_vm2, %v1532_v55, 0 }
  0x85   :  { %v110_v57 = vsub.f32 %v40_v56, %v40_v56  ;;  %v32_v58 = vpop.permute.xlu0 %31 }
  0x86   :  { %vm33_vm4 = vcmp.eq.s32.totalorder %v32_v58, %v2000_v53 }
  0x87   :  { %v1533_v59 = vsel %vm33_vm4, 1.0, %v1880_v13  ;;  %v111_v60 = vand.u32 4294901760, %v110_v57 }
  0x88   :  { %v504_v61 = vsel %vm38_vm2, %v1533_v59, 0 }
  0x89   :  { %v574_v62 = vsub.f32 %v504_v61, %v504_v61  ;;  %v112_v63 = vsub.f32 %v110_v57, %v111_v60 }
  0x8b   :  { %v113_v0 = vand.u32 4294901760, %v112_v63  ;;  %v575_v1 = vand.u32 4294901760, %v574_v62 }
  0x8d   :  { %1611 = vmatmul.mubr.f32.vlgmr.msra.gmra.mrb[0].mxu0 %v113_v0  ;;  %v576_v2 = vsub.f32 %v574_v62, %v575_v1 }
  0x8e   :  { %1761 = vmatpush3.bf16.msra.mxu0 %v1760_v27  ;;  %1617 = vmatprep.mubr.msk.f32.mxu0 %vm1879_vm0, %v1880_v13  ;;  %v1103_v27 = vsub.f32 %v2073_v14, %v1102_v23 }
  0x8f   :  { %v577_v3 = vand.u32 4294901760, %v576_v2  ;;  %1762 = vmatprep.subr.bf16.mxu0 %v1878_v10 }
  0x90   :  { %v1104_v29 = vand.u32 4294901760, %v1103_v27 }
  0x91   :  { %1653 = vmatmul.mubr.f32.vlgmr.msra.gmra.mrb[0].mxu1 %v577_v3 }
  0x92   :  { %1779 = vmatpush3.bf16.msra.mxu1 %v1778_v33  ;;  %1659 = vmatprep.mubr.msk.f32.mxu1 %vm1879_vm0, %v1880_v13 }
  0x93   :  { %1780 = vmatprep.subr.bf16.mxu1 %v1878_v10 }
  0x95   :  { %1618 = vmatmul.mubr.msk.f32.vlgmr.msra.gmra.mrb[0].mxu0 %vm38_vm2, %v1532_v55 }
  0x96   :  { %1764 = vmatpush3.bf16.msra.mxu0 %v1763_v32  ;;  %1624 = vmatprep.mubr.msk.f32.mxu0 %vm1879_vm0, %v1880_v13 }
  0x97   :  { %1765 = vmatprep.subr.bf16.mxu0 %v1878_v10 }
  0x99   :  { %1660 = vmatmul.mubr.msk.f32.vlgmr.msra.gmra.mrb[0].mxu1 %vm38_vm2, %v1533_v59 }
  0x9a   :  { %1782 = vmatpush3.bf16.msra.mxu1 %v1781_v34  ;;  %1666 = vmatprep.mubr.msk.f32.mxu1 %vm1879_vm0, %v1880_v13 }
  0x9b   :  { %1783 = vmatprep.subr.bf16.mxu1 %v1878_v10 }
  0x9c   :  { %v982_v31 = vpop.xlane.xlu1 %981 }
  0x9d   :  { %1625 = vmatmul.mubr.f32.vlgmr.msra.gmra.mrb[0].mxu0 %v110_v57  ;;  %v983_v32 = vrot.slane %v982_v31, 4 }
  0x9e   :  { %1767 = vmatpush3.bf16.msra.mxu0 %v1924_v7  ;;  %1631 = vmatprep.mubr.msk.f32.mxu0 %vm1879_vm0, %v1880_v13 }
  0x9f   :  { %1768 = vmatprep.subr.bf16.mxu0 %v1878_v10  ;;  %v984_v34 = vadd.f32 %v983_v32, %v982_v31 }
  0xa1   :  { %1667 = vmatmul.mubr.f32.vlgmr.msra.gmra.mrb[0].mxu1 %v574_v62 }
  0xa2   :  { %1785 = vmatpush3.bf16.msra.mxu1 %v1948_v20  ;;  %1673 = vmatprep.mubr.msk.f32.mxu1 %vm1879_vm0, %v1880_v13 }
  0xa3   :  { %1786 = vmatprep.subr.bf16.mxu1 %v1878_v10 }
  0xa5   :  { %1632 = vmatmul.mubr.f32.vlgmr.msra.gmra.mrb[0].mxu0 %v111_v60 }
  0xa6   :  { %1770 = vmatpush3.bf16.msra.mxu0 %v1964_v35  ;;  %1638 = vmatprep.mubr.msk.f32.mxu0 %vm1879_vm0, %v1880_v13  ;;  %v985_v35 = vrot.slane %v984_v34, 2 }
  0xa7   :  { %1771 = vmatprep.subr.bf16.mxu0 %v1878_v10 }
  0xa8   :  { %v986_v38 = vadd.f32 %v985_v35, %v984_v34 }
  0xa9   :  { %1674 = vmatmul.mubr.f32.vlgmr.msra.gmra.mrb[0].mxu1 %v575_v1 }
  0xaa   :  { %1788 = vmatpush3.bf16.msra.mxu1 %v1966_v36  ;;  %1680 = vmatprep.mubr.msk.f32.mxu1 %vm1879_vm0, %v1880_v13  ;;  %v1805_v36 = vpack.c.bf16 %v2068_v11, %v2065_v9  ;;  %v987_v39 = vrot.slane %v986_v38, 1 }
  0xab   :  { %1789 = vmatprep.subr.bf16.mxu1 %v1878_v10 }
  0xad   :  { %1639 = vmatmul.mubr.msk.f32.vlgmr.msra.gmra.mrb[0].mxu0 %vm38_vm2, %v1532_v55 }
  0xae   :  { %1773 = vmatpush3.bf16.msra.mxu0 %v1924_v7  ;;  %1645 = vmatprep.mubr.msk.f32.mxu0 %vm1879_vm0, %v1880_v13  ;;  %v1016_v7 = vand.u32 4294901760, %v1986_v40 }
  0xaf   :  { %1810 = vmatprep.subr.bf16.mxu0 %v1878_v10 }
  0xb0   :  { %v2070_v12 = vpack.c.bf16 %v1016_v7, %v1013_v6  ;;  %v2076_v15 = vsub.f32 %v1986_v40, %v1016_v7  ;;  %v988_v40 = vadd.f32 %v987_v39, %v986_v38 }
  0xb1   :  { %1681 = vmatmul.mubr.msk.f32.vlgmr.msra.gmra.mrb[0].mxu1 %vm38_vm2, %v1533_v59 }
  0xb2   :  { %1791 = vmatpush3.bf16.msra.mxu1 %v1948_v20  ;;  %1687 = vmatprep.mubr.msk.f32.mxu1 %vm1879_vm0, %v1880_v13  ;;  %v1096_v20 = vsub.f32 %v2068_v11, %v1095_v17  ;;  %v1109_v24 = vand.u32 4294901760, %v2076_v15  ;;  %v1808_v37 = vpack.c.bf16 %v2076_v15, %v2073_v14  ;;  %1857 = vpush %v988_v40 }
  0xb3   :  { %1792 = vmatprep.subr.bf16.mxu1 %v1878_v10 }
  0xb4   :  { %v1097_v22 = vand.u32 4294901760, %v1096_v20  ;;  %v1820_v26 = vpack.c.bf16 %v1109_v24, %v1102_v23  ;;  %v1110_v28 = vsub.f32 %v2076_v15, %v1109_v24 }
  0xb5   :  { %1646 = vmatmul.mubr.msk.f32.vlgmr.msra.gmra.mrb[0].mxu0 %vm38_vm2, %v1532_v55 }
  0xb6   :  { %1731 = vmatprep.mubr.msk.f32.mxu0 %vm1879_vm0, %v1880_v13  ;;  %1812 = vmatpush3.bf16.msra.mxu0 %v2058_v8  ;;  %v1799_v25 = vpack.c.bf16 %v1097_v22, %v1090_v21  ;;  %v1111_v30 = vand.u32 4294901760, %v1110_v28 }
  0xb7   :  { %1813 = vmatprep.subr.bf16.mxu0 %v1878_v10 }
  0xb8   :  { %v1802_v33 = vpack.c.bf16 %v1111_v30, %v1104_v29 }
  0xb9   :  { %1688 = vmatmul.mubr.msk.f32.vlgmr.msra.gmra.mrb[0].mxu1 %vm38_vm2, %v1533_v59 }
  0xba   :  { %1698 = vmatprep.mubr.msk.f32.mxu1 %vm1879_vm0, %v1880_v13  ;;  %1794 = vmatpush3.bf16.msra.mxu1 %v2058_v8 }
  0xbb   :  { %1795 = vmatprep.subr.bf16.mxu1 %v1878_v10  ;;  %1815 = vmatpush3.bf16.msra.mxu0 %v2070_v12 }
  0xbc   :  { %1816 = vmatprep.subr.bf16.mxu0 %v1878_v10 }
  0xbe   :  { %1797 = vmatpush3.bf16.msra.mxu1 %v2070_v12 }
  0xbf   :  { %1798 = vmatprep.subr.bf16.mxu1 %v1878_v10 }
  0xe3   :  { %s1858_s4 = spop %1857 }
  0xe4   :  { %v990_v41 = vstv %s1858_s4 }
  0xe5   :  { %1873 = vrsqrt.f32 %v990_v41  ;;  %vm993_vm5 = vcmp.eq.f32.partialorder %v990_v41, inf  ;;  %v996_v43 = vand.u32 2147483648, %v990_v41  ;;  %vm995_vm6 = vcmp.eq.f32.partialorder %v990_v41, 0.0 }
  0xef   :  { %v1874_v42 = vpop.eup %1873 }
  0xf0   :  { %v992_v44 = vmul.f32 %v1874_v42, %v990_v41 }
  0xf2   :  { %v994_v45 = vsel %vm993_vm5, %v990_v41, %v992_v44 }
  0xf3   :  { %v997_v46 = vsel %vm995_vm6, %v996_v43, %v994_v45 }
  0xf4   :  { %1859 = vpush %v997_v46 }
 0x125   :  { %s1860_s9 = spop %1859 }
 0x126   :  { %s999_s11 = smax.f32 %s1881_s10, %s1860_s9 }
 0x127   :  { %v1000_v62 = vstv %s999_s11 }
 0x128   :  { %1875 = vrcp.f32 %v1000_v62 }
 0x132   :  { %v1876_v63 = vpop.eup %1875 }
 0x133   :  { %1861 = vpush %v1876_v63 }
 0x164   :  { %s1862_s12 = spop %1861 }
 0x165   :  { %v1495_v21 = vstv %s1862_s12 }
 0x188   :  { %v497_v47 = vpop.f32.mrb[0].mxu0 }
 0x189   :  { %v1004_v48 = vsel %vm973_vm1, %v497_v47, 0  ;;  %v1497_v49 = vmul.f32 %v497_v47, %v497_v47  ;;  %v1647_v50 = vpop.f32.mrb[1].mxu0 }
 0x18a   :  { %v1075_v51 = vand.u32 4294901760, %v1004_v48 }
 0x18b   :  { %v1498_v52 = vsel %vm973_vm1, %v1497_v49, 0.0 }
 0x18c   :  { %v1076_v54 = vsub.f32 %v1004_v48, %v1075_v51  ;;  %1499 = vadd.xlane.f32.xlu1 %v1498_v52  ;;  %v961_v55 = vpop.f32.mrb[0].mxu1 }
 0x18d   :  { %v1508_v56 = vmul.f32 %v961_v55, %v961_v55  ;;  %v1689_v57 = vpop.f32.mrb[1].mxu1 }
 0x18e   :  { %v1077_v58 = vand.u32 4294901760, %v1076_v54 }
 0x18f   :  { %v1509_v59 = vsel %vm973_vm1, %v1508_v56, 0.0 }
 0x190   :  { %v1078_v60 = vsub.f32 %v1076_v54, %v1077_v58  ;;  %1732 = vmatmul.mubr.f32.vlgmr.msra.gmra.mrb[2].mxu0 %v1077_v58  ;;  %1510 = vadd.xlane.f32.xlu0 %v1509_v59 }
 0x191   :  { %1818 = vmatpush3.bf16.msra.mxu0 %v1817_v18  ;;  %1742 = vmatprep.mubr.msk.f32.mxu0 %vm1879_vm0, %v1880_v13 }
 0x192   :  { %v1079_v61 = vand.u32 4294901760, %v1078_v60  ;;  %1819 = vmatprep.subr.bf16.mxu0 %v1878_v10 }
 0x194   :  { %1699 = vmatmul.mubr.f32.vlgmr.msra.gmra.mrb[2].mxu1 %v1079_v61 }
 0x195   :  { %1800 = vmatpush3.bf16.msra.mxu1 %v1799_v25  ;;  %1821 = vmatpush3.bf16.msra.mxu0 %v1820_v26 }
 0x196   :  { %1801 = vmatprep.subr.bf16.mxu1 %v1878_v10  ;;  %1822 = vmatprep.subr.bf16.mxu0 %v1878_v10 }
 0x197   :  { %1709 = vmatprep.mubr.msk.f32.mxu1 %vm1879_vm0, %v1880_v13 }
 0x198   :  { %1743 = vmatmul.mubr.f32.vlgmr.msra.gmra.mrb[2].mxu0 %v1075_v51 }
 0x199   :  { %1803 = vmatpush3.bf16.msra.mxu1 %v1802_v33  ;;  %1824 = vmatpush3.bf16.msra.mxu0 %v2058_v8 }
 0x19a   :  { %1804 = vmatprep.subr.bf16.mxu1 %v1878_v10  ;;  %1825 = vmatprep.subr.bf16.mxu0 %v1878_v10 }
 0x19b   :  { %1753 = vmatprep.mubr.msk.f32.mxu0 %vm1879_vm0, %v1880_v13 }
 0x19c   :  { %1710 = vmatmul.mubr.f32.vlgmr.msra.gmra.mrb[2].mxu1 %v1075_v51 }
 0x19d   :  { %1806 = vmatpush3.bf16.msra.mxu1 %v1805_v36  ;;  %1827 = vmatpush3.bf16.msra.mxu0 %v2070_v12 }
 0x19e   :  { %1807 = vmatprep.subr.bf16.mxu1 %v1878_v10  ;;  %1720 = vmatprep.mubr.msk.f32.mxu1 %vm1879_vm0, %v1880_v13 }
 0x1a0   :  { %1754 = vmatmul.mubr.f32.vlgmr.msra.gmra.mrb[2].mxu0 %v1075_v51 }
 0x1a1   :  { %1809 = vmatpush3.bf16.msra.mxu1 %v1808_v37 }
 0x1a4   :  { %1721 = vmatmul.mubr.f32.vlgmr.msra.gmra.mrb[2].mxu1 %v1076_v54 }
 0x219   :  { %v1500_v0 = vpop.xlane.xlu1 %1499 }
 0x21a   :  { %v1501_v1 = vrot.slane %v1500_v0, 4 }
 0x21c   :  { %v1502_v2 = vadd.f32 %v1501_v1, %v1500_v0 }
 0x21d   :  { %v1511_v3 = vpop.xlane.xlu0 %1510 }
 0x21e   :  { %v1503_v4 = vrot.slane %v1502_v2, 2  ;;  %v1512_v5 = vrot.slane %v1511_v3, 4 }
 0x220   :  { %v1513_v6 = vadd.f32 %v1512_v5, %v1511_v3  ;;  %v1504_v7 = vadd.f32 %v1503_v4, %v1502_v2 }
 0x222   :  { %v1514_v8 = vrot.slane %v1513_v6, 2  ;;  %v1505_v9 = vrot.slane %v1504_v7, 1 }
 0x224   :  { %v1515_v11 = vadd.f32 %v1514_v8, %v1513_v6  ;;  %v1506_v10 = vadd.f32 %v1505_v9, %v1504_v7 }
 0x226   :  { %1863 = vpush %v1506_v10  ;;  %v1516_v12 = vrot.slane %v1515_v11, 1 }
 0x228   :  { %v1517_v13 = vadd.f32 %v1516_v12, %v1515_v11 }
 0x22a   :  { %1865 = vpush %v1517_v13 }
 0x257   :  { %s1864_s13 = spop %1863 }
 0x258   :  { %v1522_v24 = vstv %s1864_s13 }
 0x25b   :  { %s1866_s14 = spop %1865 }
 0x25c   :  { %v1525_v26 = vstv %s1866_s14 }
 0x273   :  { %v1487_v14 = vpop.f32.mrb[2].mxu0 }
 0x274   :  { %v1755_v15 = vpop.f32.mrb[3].mxu0 }
 0x277   :  { %v1252_v16 = vpop.f32.mrb[2].mxu1 }
 0x278   :  { %v1828_v17 = vadd.f32 %v1487_v14, %v1252_v16  ;;  %v1722_v18 = vpop.f32.mrb[3].mxu1 }
 0x27a   :  { %v1491_v19 = vmul.f32 %v1828_v17, %v961_v55 }
 0x27c   :  { %v1492_v20 = vsel %vm973_vm1, %v1491_v19, 0.0 }
 0x27d   :  { %1493 = vadd.xlane.f32.xlu1 %v1492_v20 }
 0x30a   :  { %v1494_v22 = vpop.xlane.xlu1 %1493 }
 0x30b   :  { %v1496_v23 = vmul.f32 %v1495_v21, %v1494_v22 }
 0x30d   :  { %v1520_v25 = vsel %vm1519_vm7, %v1496_v23, 0.0 }
 0x30e   :  { %v1523_v27 = vsel %vm1521_vm8, %v1522_v24, %v1520_v25 }
 0x30f   :  { %v1526_v28 = vsel %vm1524_vm9, %v1525_v26, %v1523_v27 }
 0x310   :  { %1527 = vst [vmem:[%s2125_s5] sm:$0xff] %v1526_v28 }

</bundles_post_ra>
